<compile_context>
chip_gen: v5e
topology: v5e:2x2
jax: 0.10.0
libtpu: 0.0.40
codegen_flags: <defaults>
</compile_context>

<pallas_src>
import jax
import jax.numpy as jnp
from jax.experimental import pallas as pl
from jax.experimental.pallas import tpu as pltpu

_TM_MAX = 512                       # rows per tile (multiple of 8/16/32)
_TARGET_TILE_BYTES = 4 * 1024 * 1024  # ~4 MiB per x/out tile
_VMEM_LIMIT_BYTES = 48 * 1024 * 1024  # safe on v5e/v6e (128 MiB) and v7x (64 MiB)


def _channel_affine_kernel(scale_ref, bias_ref, x_ref, o_ref):
    # scale_ref / bias_ref: VMEM (TM, 1) f32, broadcast over the lane axis.
    # x_ref / o_ref:        VMEM (TM, TN) in x.dtype.
    x = x_ref[...].astype(jnp.float32)
    o_ref[...] = (x * scale_ref[...] + bias_ref[...]).astype(o_ref.dtype)


def _tile_sizes(rows, lanes, itemsize):
    """Pick (tm, tn): either (8/128)-aligned or equal to the full dim."""
    sub = {4: 8, 2: 16, 1: 32}.get(itemsize, 8)
    tm_cap = (_TM_MAX // sub) * sub
    tm = rows if rows <= tm_cap else tm_cap
    if lanes <= 128:
        tn = lanes
    else:
        tn_cap = max(128, (_TARGET_TILE_BYTES // max(tm * itemsize, 1)) // 128 * 128)
        tn = lanes if lanes <= tn_cap else tn_cap
    return tm, tn


def _channel_affine_pallas(x, scale, bias):
    """f(x): per-channel affine via a tiled, pipelined Pallas streaming kernel."""
    B, C, H, W = x.shape
    rows, lanes = B * C, H * W
    itemsize = jnp.dtype(x.dtype).itemsize

    x2 = x.reshape(rows, lanes)
    # Per-row (= per (b, c)) channel parameters; row index = b*C + c. Kept f32.
    scale2 = jnp.broadcast_to(scale.astype(jnp.float32)[None, :], (B, C)).reshape(rows, 1)
    bias2 = jnp.broadcast_to(bias.astype(jnp.float32)[None, :], (B, C)).reshape(rows, 1)

    tm, tn = _tile_sizes(rows, lanes, itemsize)
    gr, gl = pl.cdiv(rows, tm), pl.cdiv(lanes, tn)

    # Put the grid axis with the most blocks first so v7x's two TensorCores
    # both get work (no effect on v5e/v6e).
    if gr >= gl:
        grid = (gr, gl)
        x_map = lambda i, j: (i, j)
        p_map = lambda i, j: (i, 0)
    else:
        grid = (gl, gr)
        x_map = lambda j, i: (i, j)
        p_map = lambda j, i: (i, 0)

    cost = pl.CostEstimate(
        flops=2 * rows * lanes,
        transcendentals=0,
        bytes_accessed=2 * rows * lanes * itemsize + 2 * rows * 4,
    )

    out2 = pl.pallas_call(
        _channel_affine_kernel,
        out_shape=jax.ShapeDtypeStruct((rows, lanes), x.dtype),
        grid=grid,
        in_specs=[
            pl.BlockSpec((tm, 1), p_map),     # scale rows
            pl.BlockSpec((tm, 1), p_map),     # bias rows
            pl.BlockSpec((tm, tn), x_map),    # x tile
        ],
        out_specs=pl.BlockSpec((tm, tn), x_map),
        compiler_params=pltpu.CompilerParams(
            dimension_semantics=("parallel", "parallel"),
            vmem_limit_bytes=_VMEM_LIMIT_BYTES,
        ),
        cost_estimate=cost,
    )(scale2, bias2, x2)

    return out2.reshape(B, C, H, W)


@jax.jit
def prob_transform(x, scale, bias, flag):
    """ProbTransform.forward: return f(x) if flag != 0 else x.

    `flag` is the host/JAX-side Bernoulli draw (random.random() < p); the
    probability branch is hoisted out of the element path with lax.cond, so
    the identity path does no HBM traffic and launches no kernel.
    """
    flag_scalar = jnp.asarray(flag).reshape(()).astype(jnp.int32)
    return jax.lax.cond(
        flag_scalar != 0,
        lambda xx: _channel_affine_pallas(xx, scale, bias),
        lambda xx: xx,
        x,
    )


if __name__ == "__main__":
    key = jax.random.PRNGKey(0)
    kx, kprob = jax.random.split(key)

    B, C, H, W = 2, 4, 16, 16
    x = jax.random.normal(kx, (B, C, H, W), dtype=jnp.float32)

    # Deterministic parameters of the transform f (per-channel affine).
    scale = jnp.arange(1.0, 1.0 + C, dtype=jnp.float32) * 0.5   # [0.5, 1.0, 1.5, 2.0]
    bias = jnp.arange(C, dtype=jnp.float32) * 0.1               # [0.0, 0.1, 0.2, 0.3]

    # ProbTransform(p=1): random.random() < p -> Bernoulli draw (outside kernel).
    p = 1.0
    u = jax.random.uniform(kprob, ())
    flag = (u < p).astype(jnp.int32)

    out = jax.block_until_ready(prob_transform(x, scale, bias, flag))
    ref_fx = x * scale.reshape(1, C, 1, 1) + bias.reshape(1, C, 1, 1)
    ref = jnp.where(flag != 0, ref_fx, x)
    assert jnp.allclose(out, ref, atol=1e-6), "mismatch vs reference (flag=1)"

    # Identity branch (flag == 0): no kernel launch, x returned untouched.
    out_id = jax.block_until_ready(prob_transform(x, scale, bias, jnp.int32(0)))
    assert jnp.allclose(out_id, x), "mismatch vs reference (flag=0)"

    # Non-(8,128)-aligned shape: exercised WITHOUT padding (masked edge blocks).
    x_odd = jax.random.normal(kx, (1, 3, 7, 7), dtype=jnp.float32)
    s_odd = jnp.array([2.0, 0.5, -1.0], dtype=jnp.float32)
    b_odd = jnp.array([0.1, -0.2, 0.3], dtype=jnp.float32)
    out_odd = jax.block_until_ready(
        prob_transform(x_odd, s_odd, b_odd, jnp.int32(1)))
    ref_odd = x_odd * s_odd.reshape(1, 3, 1, 1) + b_odd.reshape(1, 3, 1, 1)
    assert jnp.allclose(out_odd, ref_odd, atol=1e-6), "mismatch (ragged shape)"

    # bf16 path: compute in f32 inside the kernel, store bf16.
    x_bf = x.astype(jnp.bfloat16)
    out_bf = jax.block_until_ready(prob_transform(x_bf, scale, bias, jnp.int32(1)))
    ref_bf = (x_bf.astype(jnp.float32) * scale.reshape(1, C, 1, 1)
              + bias.reshape(1, C, 1, 1)).astype(jnp.bfloat16)
    assert jnp.allclose(out_bf.astype(jnp.float32), ref_bf.astype(jnp.float32),
                        atol=2e-2, rtol=2e-2), "mismatch (bf16)"

    print("KERNEL_OK")
</pallas_src>

<mosaic_0001>
module attributes {stable_mosaic.version = 11 : i64} {
  func.func @_channel_affine_kernel(%arg0: i32, %arg1: i32, %arg2: memref<8x1xf32, #tpu.memory_space<vmem>>, %arg3: memref<8x1xf32, #tpu.memory_space<vmem>>, %arg4: memref<8x256xf32, #tpu.memory_space<vmem>>, %arg5: memref<8x256xf32, #tpu.memory_space<vmem>>) attributes {dimension_semantics = [#tpu.dimension_semantics<parallel>, #tpu.dimension_semantics<parallel>], iteration_bounds = array<i64: 1, 1>, scalar_prefetch = 0 : i64, scratch_operands = 0 : i64, tpu.core_type = #tpu.core_type<tc>, window_params = [{transform_indices = @transform_0, window_bounds = array<i64: 8, 1>}, {transform_indices = @transform_1, window_bounds = array<i64: 8, 1>}, {transform_indices = @transform_2, window_bounds = array<i64: 8, 256>}, {transform_indices = @transform_3, window_bounds = array<i64: 8, 256>}]} {
    %c0 = arith.constant 0 : index
    %c0_0 = arith.constant 0 : index
    %0 = vector.load %arg4[%c0, %c0_0] : memref<8x256xf32, #tpu.memory_space<vmem>>, vector<8x256xf32>
    %c0_1 = arith.constant 0 : index
    %c0_2 = arith.constant 0 : index
    %1 = vector.load %arg2[%c0_1, %c0_2] : memref<8x1xf32, #tpu.memory_space<vmem>>, vector<8x1xf32>
    %2 = vector.broadcast %1 : vector<8x1xf32> to vector<8x256xf32>
    %3 = arith.mulf %0, %2 : vector<8x256xf32>
    %c0_3 = arith.constant 0 : index
    %c0_4 = arith.constant 0 : index
    %4 = vector.load %arg3[%c0_3, %c0_4] : memref<8x1xf32, #tpu.memory_space<vmem>>, vector<8x1xf32>
    %5 = vector.broadcast %4 : vector<8x1xf32> to vector<8x256xf32>
    %6 = arith.addf %3, %5 : vector<8x256xf32>
    %c0_5 = arith.constant 0 : index
    %c0_6 = arith.constant 0 : index
    %7 = vector.load %arg5[%c0_5, %c0_6] : memref<8x256xf32, #tpu.memory_space<vmem>>, vector<8x256xf32>
    tpu.vector_store %arg5[%c0_5, %c0_6], %6 {strides = array<i32>} : memref<8x256xf32, #tpu.memory_space<vmem>>, vector<8x256xf32>,
    return
  }
  func.func @transform_0(%arg0: i32, %arg1: i32) -> (i32, i32) {
    %c0_i32 = arith.constant 0 : i32
    %c0_i32_0 = arith.constant 0 : i32
    return %arg0, %c0_i32 : i32, i32
  }
  func.func @transform_1(%arg0: i32, %arg1: i32) -> (i32, i32) {
    %c0_i32 = arith.constant 0 : i32
    %c0_i32_0 = arith.constant 0 : i32
    return %arg0, %c0_i32 : i32, i32
  }
  func.func @transform_2(%arg0: i32, %arg1: i32) -> (i32, i32) {
    %c0_i32 = arith.constant 0 : i32
    return %arg0, %arg1 : i32, i32
  }
  func.func @transform_3(%arg0: i32, %arg1: i32) -> (i32, i32) {
    %c0_i32 = arith.constant 0 : i32
    return %arg0, %arg1 : i32, i32
  }
}

</mosaic_0001>

<bundles_post_ra>
// kernel: branch_1_fun.1
= control target key start
LH: loop header
LB: loop body
LE: loop exit
PB: predicated region body
PF: predicated region fallthrough
CT: control target
= control target key end

     0   :  { %v40_v0 = vmov 0   ;;  %s79_s0 = inlined_call_operand.vmem [shape: f32[8,1], index: 0, kind: input, shape index: {}]   ;;  %s80_s1 = inlined_call_operand.vmem [shape: f32[8,1], index: 1, kind: input, shape index: {}]   ;;  %s81_s2 = inlined_call_operand.vmem [shape: f32[8,256], index: 2, kind: input, shape index: {}]   ;;  %s82_s3 = inlined_call_operand.vmem [shape: f32[8,256], index: 3, kind: output, shape index: {}]  }
   0x1   :  { %39 = vset.pattern.permute.xlu0 %v40_v0  ;;  %v16_v1 = vld [vmem:[%s79_s0] sm:$0xff]  ;;  %v15_v5 = vld [vmem:[%s81_s2 + $0x8] sm:$0xff] }
   0x2   :  { %19 = vperm.xlu0 %39, %v16_v1   ;;  %v24_v2 = vld [vmem:[%s80_s1] sm:$0xff] }
   0x3   :  { %v14_v4 = vld [vmem:[%s81_s2] sm:$0xff] }
   0xa   :  { %27 = vperm.xlu0 %39, %v24_v2  }
  0x74   :  { %v20_v3 = vpop.permute.xlu0 %19 }
  0x75   :  { %v22_v6 = vmul.f32 %v20_v3, %v14_v4  ;;  %v23_v7 = vmul.f32 %v20_v3, %v15_v5 }
  0x7c   :  { %v28_v8 = vpop.permute.xlu0 %27 }
  0x7d   :  { %v30_v9 = vadd.f32 %v28_v8, %v22_v6  ;;  %v31_v10 = vadd.f32 %v28_v8, %v23_v7 }
  0x7f   :  { %32 = vst [vmem:[%s82_s3] sm:$0xff] %v30_v9 }
  0x80   :  { %33 = vst [vmem:[%s82_s3 + $0x8] sm:$0xff] %v31_v10 }

</bundles_post_ra>
